<compile_context>
chip_gen: v5e
topology: v5e:2x2
jax: 0.10.0
libtpu: 0.0.40
codegen_flags: <defaults>
</compile_context>

<pallas_src>
import functools

import jax
import jax.numpy as jnp
from jax import lax
from jax.experimental import pallas as pl
from jax.experimental.pallas import tpu as pltpu

LANES = 128
SUBLANES = 8
BLOCK_BYTES_TARGET = 4 * 1024 * 1024   # ~4 MiB per input block per buffer
VMEM_LIMIT_BYTES = 48 * 1024 * 1024    # fits v5e/v6e (128 MiB) and v7x (64 MiB)


def _bce_blur_kernel(pred_ref, true_ref, out_ref, acc_ref, *,
                     alpha, n_valid, approx_reciprocal):
    c = pl.program_id(0)          # core-split axis ("parallel")
    i = pl.program_id(1)          # reduction axis ("arbitrary")
    n_inner = pl.num_programs(1)

    @pl.when(i == 0)
    def _():
        acc_ref[...] = jnp.zeros_like(acc_ref)

    # Cast per block; inputs may arrive as bf16 (kept narrow in HBM).
    x = pred_ref[...].astype(jnp.float32)
    y = true_ref[...].astype(jnp.float32)

    inv_alpha = 1.0 / (float(alpha) + 1e-4)  # static constant (divide folded)

    # Numerically stable BCE-with-logits, reduction='none':
    #   loss = max(x, 0) - x*y + log(1 + exp(-|x|))
    # Reuse e = exp(-|x|) for both the log term and the sigmoid.
    e = jnp.exp(-jnp.abs(x))
    bce = jnp.maximum(x, 0.0) - x * y + jnp.log1p(e)

    # sigmoid(x) = 1/(1+e) for x >= 0, e/(1+e) for x < 0   (e = exp(-|x|))
    num = jnp.where(x >= 0, 1.0, e)
    denom = 1.0 + e
    if approx_reciprocal:
        p = num * pl.reciprocal(denom, approx=True)   # single EUP vrcp
    else:
        p = num / denom                               # full-precision divide

    dx = p - y
    alpha_factor = 1.0 - jnp.exp((dx - 1.0) * inv_alpha)
    loss = bce * alpha_factor

    tm, lanes = loss.shape
    block_elems = tm * lanes
    # Logical (un-clamped) flat element offset of this block; duplicated
    # (clamped) blocks have block_start >= n_valid so they mask to zero.
    block_start = (c * n_inner + i) * block_elems
    is_full = block_start + block_elems <= n_valid

    def _reduce(v):
        # (tm, 128) -> (8, 128): pure full-vreg adds (no XLU sublane reduce).
        return v.reshape(tm // SUBLANES, SUBLANES, lanes).sum(axis=0)

    @pl.when(is_full)
    def _():
        acc_ref[...] += _reduce(loss)

    @pl.when(jnp.logical_not(is_full))
    def _():
        # Boundary / duplicated block only.  Cheap iotas: (tm,1) and (1,128);
        # broadcast happens at the compare.  Keep jnp.where (a select), NOT a
        # multiplicative mask: OOB rows may hold garbage -> inf/NaN.
        row = lax.broadcasted_iota(jnp.int32, (tm, 1), 0)
        lane = lax.broadcasted_iota(jnp.int32, (1, lanes), 1)
        mask = (row * lanes) < (n_valid - block_start - lane)
        acc_ref[...] += _reduce(jnp.where(mask, loss, 0.0))

    @pl.when(i == n_inner - 1)
    def _():
        out_ref[...] = acc_ref[...]


def _detect_num_cores():
    # v7x has 2 TensorCores per chip; v5e/v6e have 1.  Conservative fallback.
    try:
        kind = jax.devices()[0].device_kind.lower()
    except Exception:
        return 1
    return 2 if "v7" in kind else 1


def bce_blur_with_logits_loss(pred, true, alpha=0.05, *,
                              approx_reciprocal=True, num_cores=None):
    assert pred.shape == true.shape
    n_valid = int(pred.size)
    # In-kernel flat-index masking is int32.
    assert n_valid < 2**31 - 2**22, "flat index would overflow int32"

    flat_pred = pred.reshape(-1)
    flat_true = true.reshape(-1)

    # Pad flat length to a multiple of 8*128 (<= 1023 elements) so every
    # block height is a multiple of 8 sublanes (vreg-aligned accumulator).
    # Pad values (pred=+60, true=1) give ~0 loss even without the mask.
    chunk = SUBLANES * LANES
    n_pad = (-n_valid) % chunk
    if n_pad:
        flat_pred = jnp.pad(flat_pred, (0, n_pad), constant_values=60.0)
        flat_true = jnp.pad(flat_true, (0, n_pad), constant_values=1.0)

    rows = (n_valid + n_pad) // LANES
    pred2d = flat_pred.reshape(rows, LANES)
    true2d = flat_true.reshape(rows, LANES)

    # Block height: ~4 MiB per input block (f32 -> 8192 rows, bf16 -> 16384),
    # or the whole array if it is smaller.
    itemsize = jnp.dtype(pred2d.dtype).itemsize
    tm_max = max(SUBLANES,
                 (BLOCK_BYTES_TARGET // (LANES * itemsize)) // SUBLANES * SUBLANES)
    tm = rows if rows <= tm_max else tm_max
    total_blocks = -(-rows // tm)  # ceil div

    # Split across both TensorCores only where they exist (v7x); on 1-TC
    # chips this axis would just be a serial loop plus a wasted masked block.
    if num_cores is None:
        num_cores = _detect_num_cores()
    ncores = num_cores if total_blocks >= num_cores else 1
    inner = -(-total_blocks // ncores)

    if ncores * inner == total_blocks:
        def in_map(c, i):
            return (c * inner + i, 0)
    else:
        # Odd block count on the 2-core split: clamp the single overhanging
        # block index; its contribution is fully masked in-kernel.
        def in_map(c, i):
            return (jnp.minimum(c * inner + i, total_blocks - 1), 0)

    kernel = functools.partial(_bce_blur_kernel, alpha=float(alpha),
                               n_valid=n_valid,
                               approx_reciprocal=bool(approx_reciprocal))

    # Note: if xprof on v7x shows only one busy TC, switch the leading axis
    # to pltpu.CORE_PARALLEL; "parallel" is kept here for portability.
    partials = pl.pallas_call(
        kernel,
        out_shape=jax.ShapeDtypeStruct((ncores * SUBLANES, LANES), jnp.float32),
        grid_spec=pltpu.PrefetchScalarGridSpec(
            num_scalar_prefetch=0,
            grid=(ncores, inner),
            in_specs=[
                pl.BlockSpec((tm, LANES), in_map),
                pl.BlockSpec((tm, LANES), in_map),
            ],
            out_specs=pl.BlockSpec((SUBLANES, LANES), lambda c, i: (c, 0)),
            scratch_shapes=[pltpu.VMEM((SUBLANES, LANES), jnp.float32)],
        ),
        compiler_params=pltpu.CompilerParams(
            dimension_semantics=("parallel", "arbitrary"),
            vmem_limit_bytes=VMEM_LIMIT_BYTES),
    )(pred2d, true2d)

    # Final cross-sublane / cross-lane / cross-core reduce and the mean.
    return jnp.sum(partials) / jnp.float32(n_valid)


def _reference(pred, true, alpha=0.05):
    x = pred.astype(jnp.float32)
    y = true.astype(jnp.float32)
    loss = jnp.maximum(x, 0.0) - x * y + jnp.log1p(jnp.exp(-jnp.abs(x)))
    p = jax.nn.sigmoid(x)
    dx = p - y
    af = 1.0 - jnp.exp((dx - 1.0) / (alpha + 1e-4))
    return jnp.mean(loss * af)


if __name__ == "__main__":
    key = jax.random.PRNGKey(0)
    k1, k2 = jax.random.split(key)
    # NCHW-shaped inputs, as the loss is typically applied to conv outputs.
    pred = jax.random.normal(k1, (2, 4, 16, 16), dtype=jnp.float32)
    true = (jax.random.uniform(k2, (2, 4, 16, 16)) > 0.5).astype(jnp.float32)

    ref = _reference(pred, true, alpha=0.05)

    # Exact-divide path: validates the kernel structure to tight tolerance.
    out_exact = bce_blur_with_logits_loss(pred, true, alpha=0.05,
                                          approx_reciprocal=False)
    out_exact = jax.block_until_ready(out_exact)
    assert jnp.allclose(out_exact, ref, atol=1e-5, rtol=1e-5), (out_exact, ref)

    # Default fast path (approx EUP reciprocal in the sigmoid); a small
    # relative error is expected from the hardware reciprocal approximation.
    out = bce_blur_with_logits_loss(pred, true, alpha=0.05)
    out = jax.block_until_ready(out)
    assert jnp.allclose(out, ref, atol=1e-3, rtol=5e-3), (out, ref)

    print("KERNEL_OK")
</pallas_src>

<mosaic_0001>
module attributes {stable_mosaic.version = 11 : i64} {
  func.func @_bce_blur_kernel(%arg0: i32, %arg1: i32, %arg2: memref<16x128xf32, #tpu.memory_space<vmem>>, %arg3: memref<16x128xf32, #tpu.memory_space<vmem>>, %arg4: memref<8x128xf32, #tpu.memory_space<vmem>>, %arg5: memref<8x128xf32, #tpu.memory_space<vmem>>) attributes {dimension_semantics = [#tpu.dimension_semantics<parallel>, #tpu.dimension_semantics<arbitrary>], iteration_bounds = array<i64: 1, 1>, scalar_prefetch = 0 : i64, scratch_operands = 1 : i64, tpu.core_type = #tpu.core_type<tc>, window_params = [{transform_indices = @transform_0, window_bounds = array<i64: 16, 128>}, {transform_indices = @transform_1, window_bounds = array<i64: 16, 128>}, {transform_indices = @transform_2, window_bounds = array<i64: 8, 128>}]} {
    %c0_i32 = arith.constant 0 : i32
    %0 = arith.cmpi eq, %arg1, %c0_i32 : i32
    %1 = arith.extui %0 : i1 to i32
    %c0_i32_0 = arith.constant 0 : i32
    %2 = arith.cmpi ne, %1, %c0_i32_0 : i32
    scf.if %2 {
      %cst_17 = arith.constant 0.000000e+00 : f32
      %44 = vector.broadcast %cst_17 : f32 to vector<8x128xf32>
      %c0_18 = arith.constant 0 : index
      %c0_19 = arith.constant 0 : index
      %45 = vector.load %arg5[%c0_18, %c0_19] : memref<8x128xf32, #tpu.memory_space<vmem>>, vector<8x128xf32>
      tpu.vector_store %arg5[%c0_18, %c0_19], %44 {strides = array<i32>} : memref<8x128xf32, #tpu.memory_space<vmem>>, vector<8x128xf32>,
    } else {
    }
    %c0 = arith.constant 0 : index
    %c0_1 = arith.constant 0 : index
    %3 = vector.load %arg2[%c0, %c0_1] : memref<16x128xf32, #tpu.memory_space<vmem>>, vector<16x128xf32>
    %c0_2 = arith.constant 0 : index
    %c0_3 = arith.constant 0 : index
    %4 = vector.load %arg3[%c0_2, %c0_3] : memref<16x128xf32, #tpu.memory_space<vmem>>, vector<16x128xf32>
    %5 = math.absf %3 : vector<16x128xf32>
    %cst = arith.constant 0.000000e+00 : f32
    %6 = vector.broadcast %cst : f32 to vector<16x128xf32>
    %7 = arith.subf %6, %5 : vector<16x128xf32>
    %8 = math.exp %7 : vector<16x128xf32>
    %cst_4 = arith.constant 0.000000e+00 : f32
    %9 = vector.broadcast %cst_4 : f32 to vector<16x128xf32>
    %10 = arith.maximumf %3, %9 : vector<16x128xf32>
    %11 = arith.mulf %3, %4 : vector<16x128xf32>
    %12 = arith.subf %10, %11 : vector<16x128xf32>
    %13 = math.log1p %8 : vector<16x128xf32>
    %14 = arith.addf %12, %13 : vector<16x128xf32>
    %cst_5 = arith.constant 0.000000e+00 : f32
    %15 = vector.broadcast %cst_5 : f32 to vector<16x128xf32>
    %16 = arith.cmpf oge, %3, %15 : vector<16x128xf32>
    %cst_6 = arith.constant 1.000000e+00 : f32
    %17 = vector.broadcast %cst_6 : f32 to vector<16x128xf32>
    %18 = arith.select %16, %17, %8 : vector<16x128xi1>, vector<16x128xf32>
    %cst_7 = arith.constant 1.000000e+00 : f32
    %19 = vector.broadcast %cst_7 : f32 to vector<16x128xf32>
    %20 = arith.addf %19, %8 : vector<16x128xf32>
    %21 = arith.divf %18, %20 : vector<16x128xf32>
    %22 = arith.subf %21, %4 : vector<16x128xf32>
    %cst_8 = arith.constant 1.000000e+00 : f32
    %23 = vector.broadcast %cst_8 : f32 to vector<16x128xf32>
    %24 = arith.subf %22, %23 : vector<16x128xf32>
    %cst_9 = arith.constant 19.9600792 : f32
    %25 = vector.broadcast %cst_9 : f32 to vector<16x128xf32>
    %26 = arith.mulf %24, %25 : vector<16x128xf32>
    %27 = math.exp %26 : vector<16x128xf32>
    %cst_10 = arith.constant 1.000000e+00 : f32
    %28 = vector.broadcast %cst_10 : f32 to vector<16x128xf32>
    %29 = arith.subf %28, %27 : vector<16x128xf32>
    %30 = arith.mulf %14, %29 : vector<16x128xf32>
    %c1_i32 = arith.constant 1 : i32
    %31 = arith.muli %arg0, %c1_i32 : i32
    %32 = arith.addi %31, %arg1 : i32
    %c2048_i32 = arith.constant 2048 : i32
    %33 = arith.muli %32, %c2048_i32 : i32
    %c2048_i32_11 = arith.constant 2048 : i32
    %34 = arith.addi %33, %c2048_i32_11 : i32
    %c2048_i32_12 = arith.constant 2048 : i32
    %35 = arith.cmpi sle, %34, %c2048_i32_12 : i32
    %36 = arith.extui %35 : i1 to i32
    %c0_i32_13 = arith.constant 0 : i32
    %37 = arith.cmpi ne, %36, %c0_i32_13 : i32
    scf.if %37 {
      %c0_17 = arith.constant 0 : index
      %c0_18 = arith.constant 0 : index
      %44 = vector.load %arg5[%c0_17, %c0_18] : memref<8x128xf32, #tpu.memory_space<vmem>>, vector<8x128xf32>
      %45 = vector.shape_cast %30 : vector<16x128xf32> to vector<2x8x128xf32>
      %cst_19 = arith.constant dense<0.000000e+00> : vector<8x128xf32>
      %46 = vector.multi_reduction <add>, %45, %cst_19 [0] : vector<2x8x128xf32> to vector<8x128xf32>
      %47 = arith.addf %44, %46 : vector<8x128xf32>
      %c0_20 = arith.constant 0 : index
      %c0_21 = arith.constant 0 : index
      %48 = vector.load %arg5[%c0_20, %c0_21] : memref<8x128xf32, #tpu.memory_space<vmem>>, vector<8x128xf32>
      tpu.vector_store %arg5[%c0_20, %c0_21], %47 {strides = array<i32>} : memref<8x128xf32, #tpu.memory_space<vmem>>, vector<8x128xf32>,
    } else {
    }
    %true = arith.constant true
    %38 = arith.xori %35, %true : i1
    %39 = arith.extui %38 : i1 to i32
    %c0_i32_14 = arith.constant 0 : i32
    %40 = arith.cmpi ne, %39, %c0_i32_14 : i32
    scf.if %40 {
      %44 = tpu.iota {dimensions = array<i32: 0>} : vector<16x1xi32>
      %45 = tpu.iota {dimensions = array<i32: 1>} : vector<1x128xi32>
      %c128_i32 = arith.constant 128 : i32
      %46 = vector.broadcast %c128_i32 : i32 to vector<16x1xi32>
      %47 = arith.muli %44, %46 : vector<16x1xi32>
      %c2048_i32_17 = arith.constant 2048 : i32
      %48 = arith.subi %c2048_i32_17, %33 : i32
      %49 = vector.broadcast %48 : i32 to vector<1x128xi32>
      %50 = arith.subi %49, %45 : vector<1x128xi32>
      %51 = vector.broadcast %47 : vector<16x1xi32> to vector<16x128xi32>
      %52 = vector.broadcast %50 : vector<1x128xi32> to vector<16x128xi32>
      %53 = arith.cmpi slt, %51, %52 : vector<16x128xi32>
      %c0_18 = arith.constant 0 : index
      %c0_19 = arith.constant 0 : index
      %54 = vector.load %arg5[%c0_18, %c0_19] : memref<8x128xf32, #tpu.memory_space<vmem>>, vector<8x128xf32>
      %cst_20 = arith.constant 0.000000e+00 : f32
      %55 = vector.broadcast %cst_20 : f32 to vector<16x128xf32>
      %56 = arith.select %53, %30, %55 : vector<16x128xi1>, vector<16x128xf32>
      %57 = vector.shape_cast %56 : vector<16x128xf32> to vector<2x8x128xf32>
      %cst_21 = arith.constant dense<0.000000e+00> : vector<8x128xf32>
      %58 = vector.multi_reduction <add>, %57, %cst_21 [0] : vector<2x8x128xf32> to vector<8x128xf32>
      %59 = arith.addf %54, %58 : vector<8x128xf32>
      %c0_22 = arith.constant 0 : index
      %c0_23 = arith.constant 0 : index
      %60 = vector.load %arg5[%c0_22, %c0_23] : memref<8x128xf32, #tpu.memory_space<vmem>>, vector<8x128xf32>
      tpu.vector_store %arg5[%c0_22, %c0_23], %59 {strides = array<i32>} : memref<8x128xf32, #tpu.memory_space<vmem>>, vector<8x128xf32>,
    } else {
    }
    %c0_i32_15 = arith.constant 0 : i32
    %41 = arith.cmpi eq, %arg1, %c0_i32_15 : i32
    %42 = arith.extui %41 : i1 to i32
    %c0_i32_16 = arith.constant 0 : i32
    %43 = arith.cmpi ne, %42, %c0_i32_16 : i32
    scf.if %43 {
      %c0_17 = arith.constant 0 : index
      %c0_18 = arith.constant 0 : index
      %44 = vector.load %arg5[%c0_17, %c0_18] : memref<8x128xf32, #tpu.memory_space<vmem>>, vector<8x128xf32>
      %c0_19 = arith.constant 0 : index
      %c0_20 = arith.constant 0 : index
      %45 = vector.load %arg4[%c0_19, %c0_20] : memref<8x128xf32, #tpu.memory_space<vmem>>, vector<8x128xf32>
      tpu.vector_store %arg4[%c0_19, %c0_20], %44 {strides = array<i32>} : memref<8x128xf32, #tpu.memory_space<vmem>>, vector<8x128xf32>,
    } else {
    }
    return
  }
  func.func @transform_0(%arg0: i32, %arg1: i32) -> (i32, i32) {
    %c1_i32 = arith.constant 1 : i32
    %0 = arith.muli %arg0, %c1_i32 : i32
    %1 = arith.addi %0, %arg1 : i32
    %c0_i32 = arith.constant 0 : i32
    %c0_i32_0 = arith.constant 0 : i32
    return %1, %c0_i32 : i32, i32
  }
  func.func @transform_1(%arg0: i32, %arg1: i32) -> (i32, i32) {
    %c1_i32 = arith.constant 1 : i32
    %0 = arith.muli %arg0, %c1_i32 : i32
    %1 = arith.addi %0, %arg1 : i32
    %c0_i32 = arith.constant 0 : i32
    %c0_i32_0 = arith.constant 0 : i32
    return %1, %c0_i32 : i32, i32
  }
  func.func @transform_2(%arg0: i32, %arg1: i32) -> (i32, i32) {
    %c0_i32 = arith.constant 0 : i32
    %c0_i32_0 = arith.constant 0 : i32
    return %arg0, %c0_i32 : i32, i32
  }
}

</mosaic_0001>

<bundles_post_ra>
// kernel: tpu_custom_call.1
= control target key start
LH: loop header
LB: loop body
LE: loop exit
PB: predicated region body
PF: predicated region fallthrough
CT: control target
= control target key end

     0   :  { %7 = vsyncpa [#allocation4], 0  ;;  %s367_s0 = inlined_call_operand.hbm [shape: f32[16,128], index: 0, kind: input, shape index: {}]   ;;  %s368_s1 = inlined_call_operand.hbm [shape: f32[16,128], index: 1, kind: input, shape index: {}]   ;;  %s369_s2 = inlined_call_operand.hbm [shape: f32[8,128], index: 2, kind: output, shape index: {}]  }
   0x1   :  { %8 = vsyncpa [#allocation7], 0 }
   0x2   :  { %9 = vsyncpa [#allocation5], 0  ;;  %s18_s11 = sshll.u32 %s367_s0, 4  ;;  %s306_s12 = smov [#allocation3]   ;;  %s19_s11 = int_to_ptr.hbm [resolvable:$true] %s18_s11 }
   0x3   :  { %s20_s13 = sshll.u32 %s306_s12, 4  ;;  %s35_s16 = sshll.u32 %s368_s1, 4  ;;  %s21_s13 = int_to_ptr.vmem [resolvable:$true] %s20_s13  ;;  %s36_s16 = int_to_ptr.hbm [resolvable:$true] %s35_s16 }
   0x4   :  { %s307_s17 = smov 128   ;;  %s308_s18 = smov 8  }
   0x5   :  { %26 = dma.hbm_to_vmem [thread:$0]  %s19_s11, 256, %s21_s13, [#allocation4], %s307_s17, %s307_s17, %s308_s18  }
   0x6   :  { %s309_s19 = smov [#allocation6]  }
   0x7   :  { %s37_s20 = sshll.u32 %s309_s19, 4  ;;  %s38_s20 = int_to_ptr.vmem [resolvable:$true] %s37_s20 }
   0x8   :  { %43 = dma.hbm_to_vmem [thread:$0]  %s36_s16, 256, %s38_s20, [#allocation7], %s307_s17, %s307_s17, %s308_s18  }
   0x9   :  { %300 = dma.done.wait [#allocation4], 256  }
   0xa   :  { %301 = vsyncadd [#allocation4], 4294967040 }
   0xb   :  { %302 = dma.done.wait [#allocation7], 256  }
   0xc   :  { %303 = vsyncadd [#allocation7], 4294967040  ;;  %v332_v0 = vld [vmem:[#allocation3] sm:$0xff]  ;;  %v334_v1 = vld [vmem:[#allocation3 + $0x8] sm:$0xff]  ;;  %s310_s0 = smov [#allocation8]   ;;  %s194_s23 = sshll.u32 %s369_s2, 4  ;;  %s195_s23 = int_to_ptr.hbm [resolvable:$true] %s194_s23 }
   0xd   :  { %v65_v2 = vand.u32 2147483647, %v332_v0  ;;  %v66_v3 = vand.u32 2147483647, %v334_v1  ;;  %vm99_vm4 = vcmp.ge.f32.partialorder %v332_v0, 0.0  ;;  %vm100_vm5 = vcmp.ge.f32.partialorder %v334_v1, 0.0 }
   0xe   :  { %v63_v32 = vld [vmem:[#allocation6] sm:$0xff]  ;;  %v64_v35 = vld [vmem:[#allocation6 + $0x8] sm:$0xff]  ;;  %v73_v52 = vmax.f32 %v332_v0, 0.0  ;;  %v74_v53 = vmax.f32 %v334_v1, 0.0  ;;  %s192_s1 = sshll.u32 %s310_s0, 4  ;;  %s193_s1 = int_to_ptr.vmem [resolvable:$true] %s192_s1 }
   0xf   :  { %v67_v4 = vsub.f32 0.0, %v65_v2  ;;  %v68_v5 = vsub.f32 0.0, %v66_v3  ;;  %v75_v54 = vmul.f32 %v63_v32, %v332_v0  ;;  %v76_v56 = vmul.f32 %v64_v35, %v334_v1 }
  0x11   :  { %v69_v6 = vmul.f32 1.442695, %v67_v4  ;;  %v71_v7 = vmul.f32 1.442695, %v68_v5  ;;  %v77_v63 = vsub.f32 %v73_v52, %v75_v54  ;;  %v78_v2 = vsub.f32 %v74_v53, %v76_v56 }
  0x13   :  { %212 = vpow2.f32 %v69_v6 }
  0x14   :  { %214 = vpow2.f32 %v71_v7 }
  0x19   :  { %v338_v8 = vpop.eup %212 }
  0x1a   :  { %v340_v9 = vpop.eup %214  ;;  %v79_v10 = vadd.f32 1.0, %v338_v8  ;;  %v101_v28 = vsel %vm99_vm4, 1.0, %v338_v8  ;;  %v82_v36 = vmul.f32 -0.5, %v338_v8  ;;  %v85_v46 = vand.u32 2147483647, %v338_v8 }
  0x1b   :  { %v88_v11 = vadd.f32 1.0, %v340_v9  ;;  %v102_v30 = vsel %vm100_vm5, 1.0, %v340_v9  ;;  %v91_v39 = vmul.f32 -0.5, %v340_v9  ;;  %v94_v50 = vand.u32 2147483647, %v340_v9 }
  0x1c   :  { %216 = vrcp.f32 %v79_v10  ;;  %vm110_vm0 = vweird.f32 %v79_v10  ;;  %v116_v15 = vand.u32 2147483648, %v79_v10  ;;  %v114_v18 = vand.u32 2147483647, %v79_v10 }
  0x1d   :  { %218 = vrcp.f32 %v88_v11  ;;  %v131_v19 = vand.u32 2147483648, %v88_v11  ;;  %vm125_vm2 = vweird.f32 %v88_v11  ;;  %v129_v21 = vand.u32 2147483647, %v88_v11 }
  0x1e   :  { %v117_v23 = vor.u32 1.1754944e-38, %v116_v15  ;;  %vm115_vm7 = vcmp.eq.f32.partialorder %v114_v18, 8.507059e+37  ;;  %220 = vlog2.f32 %v79_v10  ;;  %v83_v43 = vadd.f32 1.0, %v82_v36 }
  0x1f   :  { %v132_v27 = vor.u32 1.1754944e-38, %v131_v19  ;;  %vm130_vm9 = vcmp.eq.f32.partialorder %v129_v21, 8.507059e+37  ;;  %222 = vlog2.f32 %v88_v11  ;;  %v92_v47 = vadd.f32 1.0, %v91_v39 }
  0x20   :  { %v84_v58 = vmul.f32 %v338_v8, %v83_v43  ;;  %vm86_vm10 = vcmp.lt.f32.partialorder %v85_v46, 0.0004427343  ;;  %vm95_vm11 = vcmp.lt.f32.partialorder %v94_v50, 0.0004427343 }
  0x21   :  { %v93_v61 = vmul.f32 %v340_v9, %v92_v47 }
  0x22   :  { %v217_v12 = vpop.eup %216 }
  0x23   :  { %v219_v13 = vpop.eup %218  ;;  %v106_v14 = vmul.f32 %v217_v12, %v79_v10  ;;  %vm111_vm1 = vweird.f32 %v217_v12 }
  0x24   :  { %v121_v16 = vmul.f32 %v219_v13, %v88_v11  ;;  %vm126_vm3 = vweird.f32 %v219_v13  ;;  %vm112_vm6 = vmor %vm110_vm0, %vm111_vm1  ;;  %v221_v45 = vpop.eup %220 }
  0x25   :  { %v107_v17 = vsub.f32 1.0, %v106_v14  ;;  %vm346_vm8 = vmor %vm125_vm2, %vm126_vm3  ;;  %v223_v49 = vpop.eup %222  ;;  %v81_v57 = vmul.f32 0.6931472, %v221_v45 }
  0x26   :  { %v122_v20 = vsub.f32 1.0, %v121_v16  ;;  %v90_v60 = vmul.f32 0.6931472, %v223_v49 }
  0x27   :  { %v108_v22 = vmul.f32 %v217_v12, %v107_v17  ;;  %v87_v3 = vsel %vm86_vm10, %v84_v58, %v81_v57 }
  0x28   :  { %v123_v24 = vmul.f32 %v219_v13, %v122_v20  ;;  %v96_v4 = vsel %vm95_vm11, %v93_v61, %v90_v60  ;;  %v97_v0 = vadd.f32 %v87_v3, %v77_v63 }
  0x29   :  { %v109_v25 = vadd.f32 %v217_v12, %v108_v22  ;;  %v98_v6 = vadd.f32 %v96_v4, %v78_v2 }
  0x2a   :  { %v124_v29 = vadd.f32 %v219_v13, %v123_v24 }
  0x2b   :  { %v113_v31 = vsel %vm112_vm6, %v217_v12, %v109_v25 }
  0x2c   :  { %v118_v33 = vsel %vm115_vm7, %v117_v23, %v113_v31  ;;  %v128_v34 = vsel %vm346_vm8, %v219_v13, %v124_v29 }
  0x2d   :  { %v119_v37 = vmul.f32 %v118_v33, %v101_v28  ;;  %v133_v38 = vsel %vm130_vm9, %v132_v27, %v128_v34 }
  0x2e   :  { %v134_v40 = vmul.f32 %v133_v38, %v102_v30 }
  0x2f   :  { %v135_v41 = vsub.f32 %v119_v37, %v63_v32 }
  0x30   :  { %v136_v42 = vsub.f32 %v134_v40, %v64_v35 }
  0x31   :  { %v205_v44 = vadd.f32 -1.0, %v135_v41 }
  0x32   :  { %v206_v48 = vadd.f32 -1.0, %v136_v42 }
  0x33   :  { %v139_v51 = vmul.f32 19.96008, %v205_v44 }
  0x34   :  { %v140_v55 = vmul.f32 19.96008, %v206_v48 }
  0x35   :  { %v141_v59 = vmul.f32 1.442695, %v139_v51 }
  0x36   :  { %v143_v62 = vmul.f32 1.442695, %v140_v55 }
  0x37   :  { %224 = vpow2.f32 %v141_v59 }
  0x38   :  { %226 = vpow2.f32 %v143_v62 }
  0x3d   :  { %v225_v5 = vpop.eup %224 }
  0x3e   :  { %v227_v1 = vpop.eup %226  ;;  %v145_v7 = vsub.f32 1.0, %v225_v5 }
  0x3f   :  { %v146_v10 = vsub.f32 1.0, %v227_v1 }
  0x40   :  { %v147_v8 = vmul.f32 %v145_v7, %v97_v0 }
  0x41   :  { %v148_v9 = vmul.f32 %v146_v10, %v98_v6 }
  0x43   :  { %v157_v11 = vadd.f32 %v148_v9, %v147_v8 }
  0x45   :  { %186 = vst [vmem:[#allocation8] sm:$0xff] %v157_v11 }
  0x46   :  { %197 = dma.vmem_to_hbm [thread:$0]  %s193_s1, 128, %s195_s23, [#allocation5]  }
  0x47   :  { %304 = dma.done.wait [#allocation5], 128  }
  0x48   :  { %305 = vsyncadd [#allocation5], 4294967168 }
  0x49   :  { %202 = vsyncpa [#allocation4], 1 }
  0x4a   :  { %203 = vsyncpa [#allocation7], 1 }
  0x4b   :  { %204 = vsyncpa [#allocation5], 1 }

</bundles_post_ra>
